<compile_context>
chip_gen: v7x
topology: tpu7x:2x2x1
jax: 0.10.0
libtpu: 0.0.40
codegen_flags: <defaults>
</compile_context>

<pallas_src>
import numpy as np
import jax
import jax.numpy as jnp
from jax.experimental import pallas as pl
from jax.experimental.pallas import tpu as pltpu

NUM_ENC_FUNCS = 6
ENCODER_DIM = 32                         # small hidden size for the example
X_DIM = 3 + NUM_ENC_FUNCS * 3 * 2        # 39
Q_DIM = 4 + NUM_ENC_FUNCS * 4 * 2        # 52
FUSED_IN = 128                           # lane-aligned fused feature width (>= 91)
POSE_PAD = 8                             # pose lanes padded 7 -> 8
BATCH_TILE = 256                         # M tile used only when batch is large


# ----------------------------------------------------------------------------
# Reference positional encoding (plain JAX, used only for the correctness check;
# matches torch positional_encoding with include_input=True, log_sampling=True).
# ----------------------------------------------------------------------------
def positional_encoding(t, num_encoding_functions=NUM_ENC_FUNCS):
    parts = [t]
    for i in range(num_encoding_functions):
        freq = jnp.asarray(2.0 ** i, dtype=t.dtype)
        parts.append(jnp.sin(t * freq))
        parts.append(jnp.cos(t * freq))
    return jnp.concatenate(parts, axis=-1)


# ----------------------------------------------------------------------------
# Fused Pallas kernel:
#   pose (tm, 8) -> in-kernel positional encoding -> 128-wide fused feature
#   -> 4-layer block-diagonal MLP -> (tm, 64) output
#   (lanes 0:32 = x-latent, lanes 32:64 = q-latent).
# ----------------------------------------------------------------------------
def fused_pose_mlp_kernel(pose_ref, gmat_ref, freq_ref, idm_ref, sinm_ref,
                          cosm_ref, w1_ref, b1_ref, w2_ref, b2_ref,
                          w3_ref, b3_ref, w4_ref, b4_ref, o_ref):
    p = pose_ref[...]                                                   # (tm, 8)
    # Replicate each pose dim into its fused feature columns (one-hot matmul).
    pe = jnp.dot(p, gmat_ref[...], preferred_element_type=jnp.float32)  # (tm, 128)
    v = pe * freq_ref[...]
    feat = (pe * idm_ref[...]
            + jnp.sin(v) * sinm_ref[...]
            + jnp.cos(v) * cosm_ref[...])                               # (tm, 128)

    h = jnp.maximum(
        jnp.dot(feat, w1_ref[...], preferred_element_type=jnp.float32) + b1_ref[...], 0.0)
    h = jnp.maximum(
        jnp.dot(h, w2_ref[...], preferred_element_type=jnp.float32) + b2_ref[...], 0.0)
    h = jnp.maximum(
        jnp.dot(h, w3_ref[...], preferred_element_type=jnp.float32) + b3_ref[...], 0.0)
    h = jnp.dot(h, w4_ref[...], preferred_element_type=jnp.float32) + b4_ref[...]
    o_ref[...] = h.astype(o_ref.dtype)


# ----------------------------------------------------------------------------
# Host-side one-time construction: encoding tables + block-diagonal weights.
# ----------------------------------------------------------------------------
def make_encoding_tables():
    """Per fused-feature-column metadata: source pose dim, frequency, mode."""
    src = np.full((FUSED_IN,), POSE_PAD - 1, dtype=np.int32)  # pad cols -> pose col 7 (zero)
    freq = np.ones((FUSED_IN,), dtype=np.float32)
    mode = np.zeros((FUSED_IN,), dtype=np.int32)              # 0 id, 1 sin, 2 cos
    col = 0
    for dims, off in ((3, 0), (4, 3)):                        # x block then q block
        for d in range(dims):                                 # include_input
            src[col] = off + d
            col += 1
        for i in range(NUM_ENC_FUNCS):                        # log-sampled freqs
            f = np.float32(2.0 ** i)
            for m in (1, 2):                                  # sin then cos
                for d in range(dims):
                    src[col] = off + d
                    freq[col] = f
                    mode[col] = m
                    col += 1
    assert col == X_DIM + Q_DIM                               # 91 used columns
    gmat = np.zeros((POSE_PAD, FUSED_IN), np.float32)
    gmat[src, np.arange(FUSED_IN)] = 1.0                      # one-hot gather matrix
    id_mask = (mode == 0).astype(np.float32)[None, :]
    sin_mask = (mode == 1).astype(np.float32)[None, :]
    cos_mask = (mode == 2).astype(np.float32)[None, :]
    return tuple(jnp.asarray(a) for a in
                 (gmat, freq[None, :], id_mask, sin_mask, cos_mask))


def _block_diag(wa, wb, rows, cols):
    w = jnp.zeros((rows, cols), jnp.float32)
    w = w.at[:wa.shape[0], :wa.shape[1]].set(wa)
    w = w.at[wa.shape[0]:wa.shape[0] + wb.shape[0],
             wa.shape[1]:wa.shape[1] + wb.shape[1]].set(wb)
    return w


def fuse_params(x_params, q_params):
    """Stack the two branch MLPs block-diagonally into one lane-aligned MLP."""
    (xw1, xb1), (xw2, xb2), (xw3, xb3), (xw4, xb4) = x_params
    (qw1, qb1), (qw2, qb2), (qw3, qb3), (qw4, qb4) = q_params
    w1 = _block_diag(xw1, qw1, FUSED_IN, 128)                 # rows 0:39 | 39:91, rest 0
    w2 = _block_diag(xw2, qw2, 128, 256)
    w3 = _block_diag(xw3, qw3, 256, 512)
    w4 = _block_diag(xw4, qw4, 512, 2 * ENCODER_DIM)
    b1 = jnp.concatenate([xb1, qb1], axis=-1)
    b2 = jnp.concatenate([xb2, qb2], axis=-1)
    b3 = jnp.concatenate([xb3, qb3], axis=-1)
    b4 = jnp.concatenate([xb4, qb4], axis=-1)
    return (w1, b1, w2, b2, w3, b3, w4, b4)


# ----------------------------------------------------------------------------
# pallas_call wrapper.
# ----------------------------------------------------------------------------
def run_fused(pose_p, enc_tables, fused_params):
    operands = (pose_p,) + enc_tables + fused_params
    b_pad = pose_p.shape[0]
    out_dim = 2 * ENCODER_DIM

    flops = 2 * b_pad * (POSE_PAD * FUSED_IN + 128 * 128 + 128 * 256
                         + 256 * 512 + 512 * out_dim)
    bytes_accessed = int(sum(op.size for op in operands) * 4 + b_pad * out_dim * 4)
    cost = pl.CostEstimate(flops=int(flops),
                           transcendentals=int(2 * b_pad * FUSED_IN),
                           bytes_accessed=bytes_accessed)

    if b_pad <= BATCH_TILE:
        # Small batch: gridless, everything is a full-array VMEM block.
        vmem_spec = pl.BlockSpec(memory_space=pltpu.MemorySpace.VMEM)
        return pl.pallas_call(
            fused_pose_mlp_kernel,
            out_shape=jax.ShapeDtypeStruct((b_pad, out_dim), jnp.float32),
            in_specs=[vmem_spec] * len(operands),
            out_specs=vmem_spec,
            cost_estimate=cost,
        )(*operands)

    # Large batch: tile M, keep encoding tables + weights VMEM-resident.
    def const_spec(shape):
        nd = len(shape)
        return pl.BlockSpec(shape, lambda i, _nd=nd: (0,) * _nd)

    in_specs = [pl.BlockSpec((BATCH_TILE, POSE_PAD), lambda i: (i, 0))]
    in_specs += [const_spec(op.shape) for op in operands[1:]]
    out_specs = pl.BlockSpec((BATCH_TILE, out_dim), lambda i: (i, 0))
    return pl.pallas_call(
        fused_pose_mlp_kernel,
        out_shape=jax.ShapeDtypeStruct((b_pad, out_dim), jnp.float32),
        grid=(b_pad // BATCH_TILE,),
        in_specs=in_specs,
        out_specs=out_specs,
        cost_estimate=cost,
        compiler_params=pltpu.CompilerParams(dimension_semantics=("parallel",)),
    )(*operands)


# ----------------------------------------------------------------------------
# PoseEncoder forward (jitted end to end).
# ----------------------------------------------------------------------------
@jax.jit
def pose_encoder_forward(pose, enc_tables, fused_params):
    B = pose.shape[0]
    if B <= BATCH_TILE:
        b_pad = max(8, ((B + 7) // 8) * 8)
    else:
        b_pad = ((B + BATCH_TILE - 1) // BATCH_TILE) * BATCH_TILE
    pose_p = jnp.zeros((b_pad, POSE_PAD), jnp.float32).at[:B, :7].set(pose)
    out = run_fused(pose_p, enc_tables, fused_params)          # (b_pad, 64)
    return out[:B, :ENCODER_DIM], out[:B, ENCODER_DIM:2 * ENCODER_DIM]


# ----------------------------------------------------------------------------
# Parameter init (deterministic; xavier_uniform weights, PyTorch-style bias).
# ----------------------------------------------------------------------------
def xavier_uniform(key, fan_in, fan_out):
    bound = jnp.sqrt(6.0 / (fan_in + fan_out))
    return jax.random.uniform(key, (fan_in, fan_out), jnp.float32, -bound, bound)


def make_mlp_params(key, dims):
    params = []
    for i in range(len(dims) - 1):
        key, kw, kb = jax.random.split(key, 3)
        w = xavier_uniform(kw, dims[i], dims[i + 1])
        bb = 1.0 / jnp.sqrt(jnp.asarray(dims[i], jnp.float32))
        b = jax.random.uniform(kb, (1, dims[i + 1]), jnp.float32, -bb, bb)
        params.append((w, b))
    return params


def _ref_mlp(x, params):
    h = x
    for i, (w, b) in enumerate(params):
        h = h @ w + b
        if i < len(params) - 1:
            h = jnp.maximum(h, 0.0)
    return h


if __name__ == "__main__":
    key = jax.random.PRNGKey(0)
    k_pose, k_x, k_q = jax.random.split(key, 3)

    B = 2
    pose = jax.random.normal(k_pose, (B, 7), jnp.float32)

    x_params = make_mlp_params(k_x, (X_DIM, 64, 128, 256, ENCODER_DIM))
    q_params = make_mlp_params(k_q, (Q_DIM, 64, 128, 256, ENCODER_DIM))

    enc_tables = make_encoding_tables()
    fused_params = fuse_params(x_params, q_params)

    latent_x, latent_q = pose_encoder_forward(pose, enc_tables, fused_params)
    latent_x = jax.block_until_ready(latent_x)
    latent_q = jax.block_until_ready(latent_q)

    # Sanity check against a pure-JAX reference of the same forward pass.
    ref_x = _ref_mlp(positional_encoding(pose[:, :3]), x_params)
    ref_q = _ref_mlp(positional_encoding(pose[:, 3:]), q_params)
    assert latent_x.shape == (B, ENCODER_DIM) and latent_q.shape == (B, ENCODER_DIM)
    assert jnp.allclose(latent_x, ref_x, atol=1e-3, rtol=1e-3)
    assert jnp.allclose(latent_q, ref_q, atol=1e-3, rtol=1e-3)

    print("KERNEL_OK")
</pallas_src>

<mosaic_0001>
module attributes {stable_mosaic.version = 11 : i64} {
  func.func @fused_pose_mlp_kernel(%arg0: memref<8x8xf32, #tpu.memory_space<vmem>>, %arg1: memref<8x128xf32, #tpu.memory_space<vmem>>, %arg2: memref<1x128xf32, #tpu.memory_space<vmem>>, %arg3: memref<1x128xf32, #tpu.memory_space<vmem>>, %arg4: memref<1x128xf32, #tpu.memory_space<vmem>>, %arg5: memref<1x128xf32, #tpu.memory_space<vmem>>, %arg6: memref<128x128xf32, #tpu.memory_space<vmem>>, %arg7: memref<1x128xf32, #tpu.memory_space<vmem>>, %arg8: memref<128x256xf32, #tpu.memory_space<vmem>>, %arg9: memref<1x256xf32, #tpu.memory_space<vmem>>, %arg10: memref<256x512xf32, #tpu.memory_space<vmem>>, %arg11: memref<1x512xf32, #tpu.memory_space<vmem>>, %arg12: memref<512x64xf32, #tpu.memory_space<vmem>>, %arg13: memref<1x64xf32, #tpu.memory_space<vmem>>, %arg14: memref<8x64xf32, #tpu.memory_space<vmem>>) attributes {dimension_semantics = [], scalar_prefetch = 0 : i64, scratch_operands = 0 : i64, tpu.core_type = #tpu.core_type<tc>} {
    %c0 = arith.constant 0 : index
    %c0_0 = arith.constant 0 : index
    %0 = vector.load %arg0[%c0, %c0_0] : memref<8x8xf32, #tpu.memory_space<vmem>>, vector<8x8xf32>
    %c0_1 = arith.constant 0 : index
    %c0_2 = arith.constant 0 : index
    %1 = vector.load %arg1[%c0_1, %c0_2] : memref<8x128xf32, #tpu.memory_space<vmem>>, vector<8x128xf32>
    %cst = arith.constant dense<0.000000e+00> : vector<8x128xf32>
    %2 = tpu.matmul %0, %1, %cst {dimension_numbers = #tpu.dot_dimension_numbers<[1], [0], [0], [1], [0, 0, 1, 1], [], []>} : vector<8x8xf32>, vector<8x128xf32>, vector<8x128xf32> -> vector<8x128xf32>
    %c0_3 = arith.constant 0 : index
    %c0_4 = arith.constant 0 : index
    %3 = vector.load %arg2[%c0_3, %c0_4] : memref<1x128xf32, #tpu.memory_space<vmem>>, vector<1x128xf32>
    %4 = vector.broadcast %3 : vector<1x128xf32> to vector<8x128xf32>
    %5 = arith.mulf %2, %4 : vector<8x128xf32>
    %c0_5 = arith.constant 0 : index
    %c0_6 = arith.constant 0 : index
    %6 = vector.load %arg3[%c0_5, %c0_6] : memref<1x128xf32, #tpu.memory_space<vmem>>, vector<1x128xf32>
    %7 = vector.broadcast %6 : vector<1x128xf32> to vector<8x128xf32>
    %8 = arith.mulf %2, %7 : vector<8x128xf32>
    %9 = math.sin %5 : vector<8x128xf32>
    %c0_7 = arith.constant 0 : index
    %c0_8 = arith.constant 0 : index
    %10 = vector.load %arg4[%c0_7, %c0_8] : memref<1x128xf32, #tpu.memory_space<vmem>>, vector<1x128xf32>
    %11 = vector.broadcast %10 : vector<1x128xf32> to vector<8x128xf32>
    %12 = arith.mulf %9, %11 : vector<8x128xf32>
    %13 = arith.addf %8, %12 : vector<8x128xf32>
    %14 = math.cos %5 : vector<8x128xf32>
    %c0_9 = arith.constant 0 : index
    %c0_10 = arith.constant 0 : index
    %15 = vector.load %arg5[%c0_9, %c0_10] : memref<1x128xf32, #tpu.memory_space<vmem>>, vector<1x128xf32>
    %16 = vector.broadcast %15 : vector<1x128xf32> to vector<8x128xf32>
    %17 = arith.mulf %14, %16 : vector<8x128xf32>
    %18 = arith.addf %13, %17 : vector<8x128xf32>
    %c0_11 = arith.constant 0 : index
    %c0_12 = arith.constant 0 : index
    %19 = vector.load %arg6[%c0_11, %c0_12] : memref<128x128xf32, #tpu.memory_space<vmem>>, vector<128x128xf32>
    %cst_13 = arith.constant dense<0.000000e+00> : vector<8x128xf32>
    %20 = tpu.matmul %18, %19, %cst_13 {dimension_numbers = #tpu.dot_dimension_numbers<[1], [0], [0], [1], [0, 0, 1, 1], [], []>} : vector<8x128xf32>, vector<128x128xf32>, vector<8x128xf32> -> vector<8x128xf32>
    %c0_14 = arith.constant 0 : index
    %c0_15 = arith.constant 0 : index
    %21 = vector.load %arg7[%c0_14, %c0_15] : memref<1x128xf32, #tpu.memory_space<vmem>>, vector<1x128xf32>
    %22 = vector.broadcast %21 : vector<1x128xf32> to vector<8x128xf32>
    %23 = arith.addf %20, %22 : vector<8x128xf32>
    %cst_16 = arith.constant 0.000000e+00 : f32
    %24 = vector.broadcast %cst_16 : f32 to vector<8x128xf32>
    %25 = arith.maximumf %23, %24 : vector<8x128xf32>
    %c0_17 = arith.constant 0 : index
    %c0_18 = arith.constant 0 : index
    %26 = vector.load %arg8[%c0_17, %c0_18] : memref<128x256xf32, #tpu.memory_space<vmem>>, vector<128x256xf32>
    %cst_19 = arith.constant dense<0.000000e+00> : vector<8x256xf32>
    %27 = tpu.matmul %25, %26, %cst_19 {dimension_numbers = #tpu.dot_dimension_numbers<[1], [0], [0], [1], [0, 0, 1, 1], [], []>} : vector<8x128xf32>, vector<128x256xf32>, vector<8x256xf32> -> vector<8x256xf32>
    %c0_20 = arith.constant 0 : index
    %c0_21 = arith.constant 0 : index
    %28 = vector.load %arg9[%c0_20, %c0_21] : memref<1x256xf32, #tpu.memory_space<vmem>>, vector<1x256xf32>
    %29 = vector.broadcast %28 : vector<1x256xf32> to vector<8x256xf32>
    %30 = arith.addf %27, %29 : vector<8x256xf32>
    %cst_22 = arith.constant 0.000000e+00 : f32
    %31 = vector.broadcast %cst_22 : f32 to vector<8x256xf32>
    %32 = arith.maximumf %30, %31 : vector<8x256xf32>
    %c0_23 = arith.constant 0 : index
    %c0_24 = arith.constant 0 : index
    %33 = vector.load %arg10[%c0_23, %c0_24] : memref<256x512xf32, #tpu.memory_space<vmem>>, vector<256x512xf32>
    %cst_25 = arith.constant dense<0.000000e+00> : vector<8x512xf32>
    %34 = tpu.matmul %32, %33, %cst_25 {dimension_numbers = #tpu.dot_dimension_numbers<[1], [0], [0], [1], [0, 0, 1, 1], [], []>} : vector<8x256xf32>, vector<256x512xf32>, vector<8x512xf32> -> vector<8x512xf32>
    %c0_26 = arith.constant 0 : index
    %c0_27 = arith.constant 0 : index
    %35 = vector.load %arg11[%c0_26, %c0_27] : memref<1x512xf32, #tpu.memory_space<vmem>>, vector<1x512xf32>
    %36 = vector.broadcast %35 : vector<1x512xf32> to vector<8x512xf32>
    %37 = arith.addf %34, %36 : vector<8x512xf32>
    %cst_28 = arith.constant 0.000000e+00 : f32
    %38 = vector.broadcast %cst_28 : f32 to vector<8x512xf32>
    %39 = arith.maximumf %37, %38 : vector<8x512xf32>
    %c0_29 = arith.constant 0 : index
    %c0_30 = arith.constant 0 : index
    %40 = vector.load %arg12[%c0_29, %c0_30] : memref<512x64xf32, #tpu.memory_space<vmem>>, vector<512x64xf32>
    %cst_31 = arith.constant dense<0.000000e+00> : vector<8x64xf32>
    %41 = tpu.matmul %39, %40, %cst_31 {dimension_numbers = #tpu.dot_dimension_numbers<[1], [0], [0], [1], [0, 0, 1, 1], [], []>} : vector<8x512xf32>, vector<512x64xf32>, vector<8x64xf32> -> vector<8x64xf32>
    %c0_32 = arith.constant 0 : index
    %c0_33 = arith.constant 0 : index
    %42 = vector.load %arg13[%c0_32, %c0_33] : memref<1x64xf32, #tpu.memory_space<vmem>>, vector<1x64xf32>
    %43 = vector.broadcast %42 : vector<1x64xf32> to vector<8x64xf32>
    %44 = arith.addf %41, %43 : vector<8x64xf32>
    %c0_34 = arith.constant 0 : index
    %c0_35 = arith.constant 0 : index
    %45 = vector.load %arg14[%c0_34, %c0_35] : memref<8x64xf32, #tpu.memory_space<vmem>>, vector<8x64xf32>
    tpu.vector_store %arg14[%c0_34, %c0_35], %44 {strides = array<i32>} : memref<8x64xf32, #tpu.memory_space<vmem>>, vector<8x64xf32>,
    return
  }
}

</mosaic_0001>

<bundles_post_ra>
// kernel: pose_encoder_forward.1
= control target key start
LH: loop header
LB: loop body
LE: loop exit
PB: predicated region body
PF: predicated region fallthrough
CT: control target
= control target key end

     0   :  { %19 = vsyncpa [#allocation3], 0  ;;  %s1539_s29 = smov [#allocation2]   ;;  %s2046_s0 = inlined_call_operand.vmem [shape: f32[8,8], index: 0, kind: input, shape index: {}]   ;;  %s2047_s1 = inlined_call_operand.vmem [shape: f32[8,128], index: 1, kind: input, shape index: {}]   ;;  %s2048_s2 = inlined_call_operand.vmem [shape: f32[1,128], index: 2, kind: input, shape index: {}]   ;;  %s2049_s3 = inlined_call_operand.vmem [shape: f32[1,128], index: 3, kind: input, shape index: {}]   ;;  %s2050_s4 = inlined_call_operand.vmem [shape: f32[1,128], index: 4, kind: input, shape index: {}]   ;;  %s2051_s5 = inlined_call_operand.vmem [shape: f32[1,128], index: 5, kind: input, shape index: {}]   ;;  %s2052_s6 = inlined_call_operand.vmem [shape: f32[128,128], index: 6, kind: input, shape index: {}]   ;;  %s2053_s7 = inlined_call_operand.vmem [shape: f32[1,128], index: 7, kind: input, shape index: {}]   ;;  %s2054_s8 = inlined_call_operand.vmem [shape: f32[128,256], index: 8, kind: input, shape index: {}]   ;;  %s2055_s9 = inlined_call_operand.vmem [shape: f32[1,256], index: 9, kind: input, shape index: {}]   ;;  %s2056_s10 = inlined_call_operand.hbm [shape: f32[256,512], index: 10, kind: input, shape index: {}]   ;;  %s2057_s11 = inlined_call_operand.vmem [shape: f32[1,512], index: 11, kind: input, shape index: {}]   ;;  %s2058_s12 = inlined_call_operand.vmem [shape: f32[512,64], index: 12, kind: input, shape index: {}]   ;;  %s2059_s13 = inlined_call_operand.vmem [shape: f32[1,64], index: 13, kind: input, shape index: {}]   ;;  %s2060_s14 = inlined_call_operand.vmem [shape: f32[8,64], index: 14, kind: output, shape index: {}]  }
   0x1   :  { %s45_s30 = sshll.u32 %s1539_s29, 4  ;;  %s1515_s17 = scalar_lea.hbm %s2056_s10, 16384  ;;  %s46_s30 = int_to_ptr.vmem [resolvable:$true] %s45_s30 }
   0x2   :  { %p1516_p0 = scmp.ne.s32.totalorder %s2056_s10, %s1515_s17  ;;  %p1519_p1 = scmp.lt.u32.totalorder %s1515_s17, %s2056_s10 }
   0x4   :  { %p1521_p2 = pnand %p1519_p1, %p1516_p0 }
   0x6   :  { %1524 = shalt.err (!%p1521_p2)
}
   0x7   :  { %s1525_s22 = scalar_lea.vmem %s46_s30, 16384  ;;  %p1530_p4 = scmp.lt.s32.totalorder %s46_s30, %s46_s30 }
   0x8   :  { %p1526_p3 = scmp.ne.s32.totalorder %s46_s30, %s1525_s22  ;;  %p1531_p5 = scmp.lt.s32.totalorder %s1525_s22, %s1525_s22 }
   0xa   :  { %p1532_p6 = por %p1531_p5, %p1530_p4 }
   0xc   :  { %p1533_p7 = pnand %p1532_p6, %p1526_p3 }
   0xe   :  { %1536 = shalt.err (!%p1533_p7)
}
   0xf   :  { %s1540_s23 = smov 512   ;;  %s1541_s24 = smov 32  }
  0x10   :  { %51 = dma.hbm_to_vmem [thread:$0]  %s2056_s10, 16384, %s46_s30, [#allocation3], %s1540_s23, %s1540_s23, %s1541_s24  }
  0x11   :  { %1537 = dma.done.wait [#allocation3], 16384  }
  0x12   :  { %1538 = vsyncadd [#allocation3], 4294950912  ;;  %v1542_v0 = vmov 0.0   ;;  %vm1543_vm0 = vmmov 0   ;;  %vm63_vm1 = vcmask 64512   ;;  %v62_v1 = vld [vmem:[%s2047_s1] sm:$0xff] }
  0x13   :  { %1207 = vmatprep.subr.mxu0 %v1542_v0  ;;  %1209 = vmatprep.mubr.msk.f32.mxu0 %vm1543_vm0, %v1542_v0  ;;  %v61_v2 = vld [vmem:[%s2046_s0] sm:$0xff]  ;;  %v379_v4 = vld [vmem:[%s2052_s6 + $0x8] sm:$0xff]  ;;  %v1544_v6 = vmov 0.0|0.0   ;;  %v380_v7 = vld [vmem:[%s2052_s6 + $0x10] sm:$0xff] }
  0x14   :  { %1244 = vmatprep.mubr.msk.f32.mxu1 %vm1543_vm0, %v1542_v0  ;;  %1208 = vmatpush3.msra.mxu0 %v62_v1  ;;  %v378_v3 = vld [vmem:[%s2052_s6] sm:$0xff]  ;;  %v381_v8 = vld [vmem:[%s2052_s6 + $0x18] sm:$0xff]  ;;  %v383_v11 = vld [vmem:[%s2052_s6 + $0x28] sm:$0xff] }
  0x15   :  { %1210 = vmatmul.mubr.msk.f32.vlgmr.msra.gmra.mrb[0].mxu0 %vm63_vm1, %v61_v2  ;;  %v1248_v5 = vpack.c.bf16 %v379_v4, %v378_v3  ;;  %1247 = vmatprep.subr.bf16.mxu1 %v1544_v6  ;;  %v1251_v9 = vpack.c.bf16 %v381_v8, %v380_v7  ;;  %v382_v10 = vld [vmem:[%s2052_s6 + $0x20] sm:$0xff]  ;;  %v384_v13 = vld [vmem:[%s2052_s6 + $0x30] sm:$0xff]  ;;  %v385_v14 = vld [vmem:[%s2052_s6 + $0x38] sm:$0xff] }
  0x16   :  { %580 = vmatprep.mubr.f32.mxu0 %v1542_v0  ;;  %v1254_v12 = vpack.c.bf16 %v383_v11, %v382_v10  ;;  %v1257_v15 = vpack.c.bf16 %v385_v14, %v384_v13  ;;  %v386_v16 = vld [vmem:[%s2052_s6 + $0x40] sm:$0xff]  ;;  %v387_v17 = vld [vmem:[%s2052_s6 + $0x48] sm:$0xff]  ;;  %v388_v19 = vld [vmem:[%s2052_s6 + $0x50] sm:$0xff] }
  0x17   :  { %1249 = vmatpush3.bf16.msra.mxu1 %v1248_v5  ;;  %v1260_v18 = vpack.c.bf16 %v387_v17, %v386_v16  ;;  %v389_v20 = vld [vmem:[%s2052_s6 + $0x58] sm:$0xff]  ;;  %v390_v22 = vld [vmem:[%s2052_s6 + $0x60] sm:$0xff]  ;;  %v391_v23 = vld [vmem:[%s2052_s6 + $0x68] sm:$0xff] }
  0x18   :  { %1250 = vmatprep.subr.bf16.mxu1 %v1544_v6  ;;  %v1263_v21 = vpack.c.bf16 %v389_v20, %v388_v19  ;;  %v1266_v24 = vpack.c.bf16 %v391_v23, %v390_v22  ;;  %v392_v25 = vld [vmem:[%s2052_s6 + $0x70] sm:$0xff]  ;;  %v393_v26 = vld [vmem:[%s2052_s6 + $0x78] sm:$0xff]  ;;  %v473_v28 = vld [vmem:[%s2054_s8 + $0x8] sm:$0xff]  ;;  %v1545_v20 = vmov 683565275  }
  0x19   :  { %v1269_v27 = vpack.c.bf16 %v393_v26, %v392_v25  ;;  %v475_v29 = vld [vmem:[%s2054_s8 + $0x18] sm:$0xff]  ;;  %v472_v30 = vld [vmem:[%s2054_s8] sm:$0xff]  ;;  %v474_v32 = vld [vmem:[%s2054_s8 + $0x10] sm:$0xff]  ;;  %v1546_v22 = vmov 2475754826  }
  0x1a   :  { %v1271_v31 = vpack.c.bf16 %v475_v29, %v473_v28  ;;  %v477_v33 = vld [vmem:[%s2054_s8 + $0x28] sm:$0xff]  ;;  %v479_v34 = vld [vmem:[%s2054_s8 + $0x38] sm:$0xff]  ;;  %v1273_v35 = vpack.c.bf16 %v474_v32, %v472_v30  ;;  %v476_v37 = vld [vmem:[%s2054_s8 + $0x20] sm:$0xff]  ;;  %v1547_v25 = vmov 2131351028  }
  0x1b   :  { %1252 = vmatpush3.bf16.msra.mxu1 %v1251_v9  ;;  %v1275_v36 = vpack.c.bf16 %v479_v34, %v477_v33  ;;  %v478_v38 = vld [vmem:[%s2054_s8 + $0x30] sm:$0xff]  ;;  %v481_v39 = vld [vmem:[%s2054_s8 + $0x48] sm:$0xff]  ;;  %v483_v40 = vld [vmem:[%s2054_s8 + $0x58] sm:$0xff]  ;;  %v1548_v28 = vmov 2102212464  }
  0x1c   :  { %1253 = vmatprep.subr.bf16.mxu1 %v1544_v6  ;;  %1272 = vmatprep.subr.bf16.mxu0 %v1271_v31  ;;  %v1277_v41 = vpack.c.bf16 %v478_v38, %v476_v37  ;;  %v1279_v42 = vpack.c.bf16 %v483_v40, %v481_v39  ;;  %v480_v43 = vld [vmem:[%s2054_s8 + $0x40] sm:$0xff]  ;;  %v482_v44 = vld [vmem:[%s2054_s8 + $0x50] sm:$0xff]  ;;  %v485_v45 = vld [vmem:[%s2054_s8 + $0x68] sm:$0xff]  ;;  %v1549_v31 = vmov 920167782  }
  0x1d   :  { %1274 = vmatpush1.bf16.msra.mxu0 %v1273_v35  ;;  %v487_v46 = vld [vmem:[%s2054_s8 + $0x78] sm:$0xff]  ;;  %v1281_v47 = vpack.c.bf16 %v482_v44, %v480_v43  ;;  %v484_v49 = vld [vmem:[%s2054_s8 + $0x60] sm:$0xff]  ;;  %v486_v50 = vld [vmem:[%s2054_s8 + $0x70] sm:$0xff]  ;;  %v1550_v34 = vmov 1326507024  }
  0x1e   :  { %1276 = vmatprep.subr.bf16.mxu0 %v1275_v36  ;;  %v1283_v48 = vpack.c.bf16 %v487_v46, %v485_v45  ;;  %v489_v51 = vld [vmem:[%s2054_s8 + $0x88] sm:$0xff]  ;;  %v491_v52 = vld [vmem:[%s2054_s8 + $0x98] sm:$0xff]  ;;  %v1285_v53 = vpack.c.bf16 %v486_v50, %v484_v49  ;;  %v488_v55 = vld [vmem:[%s2054_s8 + $0x80] sm:$0xff] }
  0x1f   :  { %1255 = vmatpush3.bf16.msra.mxu1 %v1254_v12  ;;  %v1287_v54 = vpack.c.bf16 %v491_v52, %v489_v51  ;;  %v490_v56 = vld [vmem:[%s2054_s8 + $0x90] sm:$0xff]  ;;  %v493_v57 = vld [vmem:[%s2054_s8 + $0xa8] sm:$0xff]  ;;  %v495_v58 = vld [vmem:[%s2054_s8 + $0xb8] sm:$0xff] }
  0x20   :  { %1256 = vmatprep.subr.bf16.mxu1 %v1544_v6  ;;  %v1289_v59 = vpack.c.bf16 %v490_v56, %v488_v55  ;;  %v1291_v60 = vpack.c.bf16 %v495_v58, %v493_v57  ;;  %v492_v61 = vld [vmem:[%s2054_s8 + $0xa0] sm:$0xff]  ;;  %v494_v62 = vld [vmem:[%s2054_s8 + $0xb0] sm:$0xff]  ;;  %v497_v63 = vld [vmem:[%s2054_s8 + $0xc8] sm:$0xff] }
  0x21   :  { %1278 = vmatpush1.bf16.msra.mxu0 %v1277_v41  ;;  %v499_v0 = vld [vmem:[%s2054_s8 + $0xd8] sm:$0xff]  ;;  %v1293_v1 = vpack.c.bf16 %v494_v62, %v492_v61  ;;  %v496_v3 = vld [vmem:[%s2054_s8 + $0xc0] sm:$0xff]  ;;  %v498_v4 = vld [vmem:[%s2054_s8 + $0xd0] sm:$0xff] }
  0x22   :  { %1280 = vmatprep.subr.bf16.mxu0 %v1279_v42  ;;  %v1295_v2 = vpack.c.bf16 %v499_v0, %v497_v63  ;;  %v1297_v5 = vpack.c.bf16 %v498_v4, %v496_v3 }
  0x23   :  { %1258 = vmatpush3.bf16.msra.mxu1 %v1257_v15 }
  0x24   :  { %1259 = vmatprep.subr.bf16.mxu1 %v1544_v6 }
  0x25   :  { %1282 = vmatpush1.bf16.msra.mxu0 %v1281_v47 }
  0x26   :  { %1284 = vmatprep.subr.bf16.mxu0 %v1283_v48 }
  0x27   :  { %1261 = vmatpush3.bf16.msra.mxu1 %v1260_v18 }
  0x28   :  { %1262 = vmatprep.subr.bf16.mxu1 %v1544_v6 }
  0x29   :  { %1286 = vmatpush1.bf16.msra.mxu0 %v1285_v53 }
  0x2a   :  { %1288 = vmatprep.subr.bf16.mxu0 %v1287_v54 }
  0x2b   :  { %1264 = vmatpush3.bf16.msra.mxu1 %v1263_v21 }
  0x2c   :  { %1265 = vmatprep.subr.bf16.mxu1 %v1544_v6 }
  0x2d   :  { %1290 = vmatpush1.bf16.msra.mxu0 %v1289_v59 }
  0x2e   :  { %1292 = vmatprep.subr.bf16.mxu0 %v1291_v60 }
  0x2f   :  { %1267 = vmatpush3.bf16.msra.mxu1 %v1266_v24 }
  0x30   :  { %1268 = vmatprep.subr.bf16.mxu1 %v1544_v6  ;;  %v1104_v6 = vld [vmem:[%s2048_s2] ss:$0 sm:$0xff] }
  0x31   :  { %1294 = vmatpush1.bf16.msra.mxu0 %v1293_v1 }
  0x32   :  { %1296 = vmatprep.subr.bf16.mxu0 %v1295_v2 }
  0x33   :  { %1270 = vmatpush3.bf16.msra.mxu1 %v1269_v27 }
  0x35   :  { %1298 = vmatpush1.bf16.msra.mxu0 %v1297_v5 }
  0xe8   :  { %v1779_v7 = vpop.f32.mrb[0].mxu0 }
  0xe9   :  { %v1782_v8 = vmul.f32 %v1104_v6, %v1779_v7  ;;  %v1211_v9 = vpop.f32.mrb[1].mxu0 }
  0xeb   :  { %v156_v10 = vand.u32 2139095040, %v1782_v8  ;;  %v153_v14 = vand.u32 2147483647, %v1782_v8  ;;  %vm155_vm9 = vcmp.lt.s32.totalorder %v1782_v8, 0  ;;  %vm245_vm1 = vweird.f32 %v1782_v8 }
  0xed   :  { %v157_v11 = vshrl.u32 %v156_v10, 23  ;;  %v160_v17 = vand.u32 8388607, %v153_v14  ;;  %vm154_vm10 = vcmp.le.f32.partialorder %v153_v14, 0.7853982 }
  0xef   :  { %v1106_v12 = vadd.s32 4294967169, %v157_v11  ;;  %v161_v36 = vor.u32 8388608, %v160_v17 }
  0xf1   :  { %v163_v13 = vadd.s32 1, %v1106_v12  ;;  %v201_v50 = vshll.u32 %v161_v36, 8 }
  0xf3   :  { %vm164_vm2 = vcmp.gt.s32.totalorder %v163_v13, 0 }
  0xf4   :  { %v165_v15 = vsel %vm164_vm2, %v163_v13, 0  ;;  %vm1096_vm2 = vcmask 523264  }
  0xf5   :  { %v167_v16 = vand.u32 31, %v165_v15  ;;  %v166_v19 = vshrl.u32 %v165_v15, 5 }
  0xf7   :  { %v168_v18 = vsub.s32 32, %v167_v16  ;;  %v170_v21 = vshll.u32 %v1545_v20, %v167_v16  ;;  %v173_v23 = vshll.u32 %v1546_v22, %v167_v16  ;;  %v176_v27 = vshll.u32 %v1547_v25, %v167_v16 }
  0xf8   :  { %v179_v30 = vshll.u32 %v1548_v28, %v167_v16  ;;  %v182_v33 = vshll.u32 %v1549_v31, %v167_v16  ;;  %vm185_vm3 = vcmp.lt.s32.totalorder %v166_v19, 1  ;;  %vm188_vm4 = vcmp.lt.s32.totalorder %v166_v19, 4 }
  0xf9   :  { %v171_v24 = vshrl.u32 %v1546_v22, %v168_v18  ;;  %v174_v26 = vshrl.u32 %v1547_v25, %v168_v18  ;;  %v177_v29 = vshrl.u32 %v1548_v28, %v168_v18  ;;  %v180_v32 = vshrl.u32 %v1549_v31, %v168_v18 }
  0xfa   :  { %v183_v35 = vshrl.u32 %v1550_v34, %v168_v18  ;;  %v169_v45 = vshrl.u32 %v1545_v20, %v168_v18  ;;  %vm187_vm5 = vcmp.lt.s32.totalorder %v166_v19, 3  ;;  %vm186_vm6 = vcmp.lt.s32.totalorder %v166_v19, 2 }
  0xfb   :  { %v172_v37 = vor.u32 %v171_v24, %v170_v21  ;;  %v175_v38 = vor.u32 %v174_v26, %v173_v23  ;;  %v178_v39 = vor.u32 %v177_v29, %v176_v27  ;;  %v181_v40 = vor.u32 %v180_v32, %v179_v30 }
  0xfc   :  { %v184_v41 = vor.u32 %v183_v35, %v182_v33 }
  0xfd   :  { %v190_v42 = vsel %vm188_vm4, %v178_v39, 2102212464  ;;  %v193_v43 = vsel %vm185_vm3, %v172_v37, %v175_v38  ;;  %v197_v44 = vsel %vm185_vm3, %v175_v38, %v178_v39  ;;  %v194_v46 = vsel %vm188_vm4, %v181_v40, 920167782 }
  0xfe   :  { %v198_v47 = vsel %vm188_vm4, %v184_v41, 1326507024  ;;  %v195_v48 = vsel %vm187_vm5, %v178_v39, %v194_v46  ;;  %v189_v51 = vsel %vm185_vm3, %v169_v45, %v172_v37  ;;  %v191_v52 = vsel %vm187_vm5, %v175_v38, %v190_v42  ;;  %v1105_v38 = vld [vmem:[%s2049_s3] ss:$0 sm:$0xff] }
  0xff   :  { %v199_v49 = vsel %vm187_vm5, %v181_v40, %v198_v47  ;;  %v196_v53 = vsel %vm186_vm6, %v193_v43, %v195_v48  ;;  %v192_v59 = vsel %vm186_vm6, %v189_v51, %v191_v52  ;;  %v1110_v40 = vld [vmem:[%s2050_s4] ss:$0 sm:$0xff]  ;;  %v152_v47 = vmul.f32 %v1105_v38, %v1779_v7  ;;  %v501_v52 = vld [vmem:[%s2054_s8 + $0xe8] sm:$0xff]  ;;  %v502_v7 = vld [vmem:[%s2054_s8 + $0xf0] sm:$0xff] }
 0x100   :  { %v200_v54 = vsel %vm186_vm6, %v197_v44, %v199_v49  ;;  %v1791_v57 = vmul.u32.u64.low %v201_v50, %v196_v53  ;;  %v1792_v58 = vmul.u32.u64.high %v201_v50, %v196_v53, %v1791_v57  ;;  %v208_v61 = vmul.u32 %v201_v50, %v192_v59  ;;  %v1115_v46 = vld [vmem:[%s2051_s5] ss:$0 sm:$0xff] }
 0x101   :  { %v1788_v55 = vmul.u32.u64.low %v201_v50, %v200_v54  ;;  %v1789_v56 = vmul.u32.u64.high %v201_v50, %v200_v54, %v1788_v55  ;;  %v500_v54 = vld [vmem:[%s2054_s8 + $0xe0] sm:$0xff] }
 0x102   :  { %v211_v60 = vadd.s32 1, %v1792_v58  ;;  %v1301_v55 = vpack.c.bf16 %v502_v7, %v500_v54  ;;  %v665_v54 = vld [vmem:[#allocation2 + $0x260] sm:$0xff] }
 0x103   :  { %vm210_vm7 = vc.u32 %v1789_v56, %v1791_v57  ;;  %v209_v11 = vadd.s32 %v1791_v57, %v1789_v56  ;;  %v590_v56 = vld [vmem:[#allocation2 + $0x8] sm:$0xff] }
 0x104   :  { %v212_v62 = vsel %vm210_vm7, %v211_v60, %v1792_v58  ;;  %v594_v57 = vld [vmem:[#allocation2 + $0x28] sm:$0xff]  ;;  %v592_v58 = vld [vmem:[#allocation2 + $0x18] sm:$0xff] }
 0x105   :  { %v213_v63 = vadd.s32 %v212_v62, %v208_v61  ;;  %v1303_v59 = vpack.c.bf16 %v594_v57, %v590_v56  ;;  %v596_v60 = vld [vmem:[#allocation2 + $0x38] sm:$0xff]  ;;  %v589_v61 = vld [vmem:[#allocation2] sm:$0xff]  ;;  %v674_v56 = vld [vmem:[#allocation2 + $0x2a8] sm:$0xff] }
 0x106   :  { %v593_v62 = vld [vmem:[#allocation2 + $0x20] sm:$0xff] }
 0x107   :  { %v214_v0 = vadd.s32 536870912, %v213_v63  ;;  %1304 = vmatprep.subr.bf16.mxu1 %v1303_v59  ;;  %v673_v59 = vld [vmem:[#allocation2 + $0x2a0] sm:$0xff] }
 0x109   :  { %v215_v1 = vshrl.u32 %v214_v0, 30  ;;  %v1305_v0 = vpack.c.bf16 %v593_v62, %v589_v61  ;;  %v678_v61 = vld [vmem:[#allocation2 + $0x2c8] sm:$0xff] }
 0x10a   :  { %v682_v62 = vld [vmem:[#allocation2 + $0x2e8] sm:$0xff] }
 0x10b   :  { %v216_v2 = vshll.u32 %v215_v1, 30  ;;  %v239_v24 = vsub.s32 4, %v215_v1 }
 0x10d   :  { %v217_v3 = vsub.s32 %v213_v63, %v216_v2  ;;  %v240_v27 = vsel %vm155_vm9, %v239_v24, %v215_v1  ;;  %v1367_v63 = vpack.c.bf16 %v596_v60, %v592_v58  ;;  %v598_v1 = vld [vmem:[#allocation2 + $0x48] sm:$0xff]  ;;  %v669_v58 = vld [vmem:[#allocation2 + $0x280] sm:$0xff] }
 0x10e   :  { %v242_v29 = vsel %vm154_vm10, 0, %v240_v27  ;;  %v602_v2 = vld [vmem:[#allocation2 + $0x68] sm:$0xff]  ;;  %v1345_v60 = vpack.c.bf16 %v673_v59, %v669_v58  ;;  %v639_v59 = vld [vmem:[#allocation2 + $0x190] sm:$0xff] }
 0x10f   :  { %v219_v4 = vsub.s32 0, %v217_v3  ;;  %v246_v30 = vadd.s32 3, %v242_v29  ;;  %v359_v32 = vand.u32 3, %v242_v29  ;;  %v634_v29 = vld [vmem:[#allocation2 + $0x168] sm:$0xff] }
 0x111   :  { %v1107_v5 = vmin.u32 %v219_v4, %v217_v3  ;;  %v247_v31 = vand.u32 3, %v246_v30  ;;  %vm364_vm12 = vcmp.eq.s32.totalorder %v359_v32, 2  ;;  %vm361_vm14 = vcmp.eq.s32.totalorder %v359_v32, 0  ;;  %v597_v4 = vld [vmem:[#allocation2 + $0x40] sm:$0xff] }
 0x112   :  { %vm360_vm0 = vcmp.lt.s32.totalorder %v359_v32, 2  ;;  %v633_v32 = vld [vmem:[#allocation2 + $0x160] sm:$0xff] }
 0x113   :  { %v221_v6 = vclz %v1107_v5  ;;  %vm252_vm11 = vcmp.eq.s32.totalorder %v247_v31, 2  ;;  %vm249_vm13 = vcmp.eq.s32.totalorder %v247_v31, 0  ;;  %vm248_vm15 = vcmp.lt.s32.totalorder %v247_v31, 2  ;;  %v601_v5 = vld [vmem:[#allocation2 + $0x60] sm:$0xff] }
 0x114   :  { %v629_v31 = vld [vmem:[#allocation2 + $0x140] sm:$0xff] }
 0x115   :  { %v1108_v9 = vadd.s32 4294967294, %v221_v6  ;;  %v1309_v6 = vpack.c.bf16 %v601_v5, %v597_v4  ;;  %v690_v4 = vld [vmem:[#allocation2 + $0x328] sm:$0xff] }
 0x117   :  { %vm1109_vm8 = vcmp.lt.s32.totalorder %v1108_v9, 0 }
 0x118   :  { %v224_v10 = vsel %vm1109_vm8, 0, %v1108_v9  ;;  %v606_v9 = vld [vmem:[#allocation2 + $0x88] sm:$0xff] }
 0x119   :  { %v225_v12 = vsub.s32 32, %v224_v10  ;;  %v229_v13 = vsub.s32 4294967266, %v224_v10  ;;  %v226_v15 = vshll.u32 %v217_v3, %v224_v10  ;;  %v1307_v3 = vpack.c.bf16 %v602_v2, %v598_v1  ;;  %v610_v10 = vld [vmem:[#allocation2 + $0xa8] sm:$0xff]  ;;  %v681_v1 = vld [vmem:[#allocation2 + $0x2e0] sm:$0xff] }
 0x11b   :  { %v227_v16 = vshrl.u32 %v209_v11, %v225_v12  ;;  %v230_v17 = vadd.s32 127, %v229_v13  ;;  %v1311_v11 = vpack.c.bf16 %v610_v10, %v606_v9  ;;  %v605_v12 = vld [vmem:[#allocation2 + $0x80] sm:$0xff] }
 0x11c   :  { %v609_v13 = vld [vmem:[#allocation2 + $0xa0] sm:$0xff] }
 0x11d   :  { %v228_v18 = vor.u32 %v227_v16, %v226_v15  ;;  %v231_v19 = vshll.u32 %v230_v17, 23  ;;  %v1313_v15 = vpack.c.bf16 %v609_v13, %v605_v12  ;;  %v614_v16 = vld [vmem:[#allocation2 + $0xc8] sm:$0xff]  ;;  %v689_v9 = vld [vmem:[#allocation2 + $0x320] sm:$0xff] }
 0x11e   :  { %v618_v17 = vld [vmem:[#allocation2 + $0xe8] sm:$0xff] }
 0x11f   :  { %v232_v20 = vor.u32 4788187, %v231_v19  ;;  %v235_v22 = vcvt.s32.f32 %v228_v18  ;;  %v1315_v18 = vpack.c.bf16 %v618_v17, %v614_v16  ;;  %v613_v19 = vld [vmem:[#allocation2 + $0xc0] sm:$0xff]  ;;  %v698_v12 = vld [vmem:[#allocation2 + $0x368] sm:$0xff] }
 0x120   :  { %v697_v16 = vld [vmem:[#allocation2 + $0x360] sm:$0xff] }
 0x121   :  { %v233_v21 = vand.u32 2147483647, %v232_v20  ;;  %v617_v20 = vld [vmem:[#allocation2 + $0xe0] sm:$0xff] }
 0x123   :  { %v236_v23 = vmul.f32 %v235_v22, %v233_v21  ;;  %v1317_v21 = vpack.c.bf16 %v617_v20, %v613_v19  ;;  %v622_v22 = vld [vmem:[#allocation2 + $0x108] sm:$0xff] }
 0x124   :  { %v706_v19 = vld [vmem:[#allocation2 + $0x3a8] sm:$0xff] }
 0x125   :  { %v237_v25 = vxor.u32 2147483648, %v236_v23 }
 0x127   :  { %v238_v26 = vsel %vm155_vm9, %v237_v25, %v236_v23  ;;  %v626_v23 = vld [vmem:[#allocation2 + $0x128] sm:$0xff]  ;;  %v621_v25 = vld [vmem:[#allocation2 + $0x100] sm:$0xff] }
 0x128   :  { %v241_v28 = vsel %vm154_vm10, %v1782_v8, %v238_v26  ;;  %v503_v8 = vld [vmem:[%s2054_s8 + $0xf8] sm:$0xff]  ;;  %v1319_v24 = vpack.c.bf16 %v626_v23, %v622_v22  ;;  %v625_v26 = vld [vmem:[#allocation2 + $0x120] sm:$0xff] }
 0x129   :  { %1511 = vcosq.f32 %v241_v28  ;;  %v1299_v53 = vpack.c.bf16 %v503_v8, %v501_v52  ;;  %v1321_v27 = vpack.c.bf16 %v625_v26, %v621_v25  ;;  %v666_v52 = vld [vmem:[#allocation2 + $0x268] sm:$0xff]  ;;  %v591_v22 = vld [vmem:[#allocation2 + $0x10] sm:$0xff]  ;;  %v600_v25 = vld [vmem:[#allocation2 + $0x58] sm:$0xff] }
 0x12a   :  { %1513 = vsinq.f32 %v241_v28  ;;  %v630_v28 = vld [vmem:[#allocation2 + $0x148] sm:$0xff]  ;;  %v595_v23 = vld [vmem:[#allocation2 + $0x30] sm:$0xff]  ;;  %v604_v26 = vld [vmem:[#allocation2 + $0x78] sm:$0xff] }
 0x12b   :  { %1300 = vmatprep.subr.bf16.mxu0 %v1299_v53  ;;  %v1323_v30 = vpack.c.bf16 %v634_v29, %v630_v28  ;;  %v661_v53 = vld [vmem:[#allocation2 + $0x240] sm:$0xff]  ;;  %v1369_v29 = vpack.c.bf16 %v595_v23, %v591_v22  ;;  %v671_v22 = vld [vmem:[#allocation2 + $0x290] sm:$0xff] }
 0x12c   :  { %1302 = vmatpush1.bf16.msra.mxu0 %v1301_v55  ;;  %v1341_v7 = vpack.c.bf16 %v665_v54, %v661_v53  ;;  %v670_v55 = vld [vmem:[#allocation2 + $0x288] sm:$0xff]  ;;  %v631_v54 = vld [vmem:[#allocation2 + $0x150] sm:$0xff] }
 0x12d   :  { %1368 = vmatprep.subr.bf16.mxu0 %v1367_v63  ;;  %v1343_v57 = vpack.c.bf16 %v674_v56, %v670_v55  ;;  %v1347_v63 = vpack.c.bf16 %v682_v62, %v678_v61  ;;  %v640_v55 = vld [vmem:[#allocation2 + $0x198] sm:$0xff]  ;;  %v675_v23 = vld [vmem:[#allocation2 + $0x2b0] sm:$0xff] }
 0x12e   :  { %v644_v56 = vld [vmem:[#allocation2 + $0x1b8] sm:$0xff] }
 0x12f   :  { %v1391_v58 = vpack.c.bf16 %v644_v56, %v640_v55  ;;  %v648_v61 = vld [vmem:[#allocation2 + $0x1d8] sm:$0xff]  ;;  %v713_v55 = vld [vmem:[#allocation2 + $0x3e0] sm:$0xff] }
 0x130   :  { %v652_v62 = vld [vmem:[#allocation2 + $0x1f8] sm:$0xff] }
 0x133   :  { %v1512_v33 = vpop.eup %1511 }
 0x134   :  { %v1514_v34 = vpop.eup %1513  ;;  %v253_v35 = vxor.u32 2147483648, %v1512_v33 }
 0x135   :  { %v250_v36 = vxor.u32 2147483648, %v1514_v34 }
 0x136   :  { %v254_v37 = vsel %vm252_vm11, %v253_v35, %v1514_v34  ;;  %v366_v14 = vsel %vm364_vm12, %v253_v35, %v1514_v34  ;;  %v638_v34 = vld [vmem:[#allocation2 + $0x188] sm:$0xff] }
 0x137   :  { %v251_v39 = vsel %vm249_vm13, %v1512_v33, %v250_v36  ;;  %v363_v41 = vsel %vm361_vm14, %v1512_v33, %v250_v36  ;;  %v1325_v33 = vpack.c.bf16 %v633_v32, %v629_v31  ;;  %v642_v35 = vld [vmem:[#allocation2 + $0x1a8] sm:$0xff]  ;;  %v1371_v31 = vpack.c.bf16 %v604_v26, %v600_v25  ;;  %v599_v32 = vld [vmem:[#allocation2 + $0x50] sm:$0xff]  ;;  %v684_v25 = vld [vmem:[#allocation2 + $0x2f8] sm:$0xff] }
 0x138   :  { %v255_v42 = vsel %vm248_vm15, %v251_v39, %v254_v37  ;;  %v367_v43 = vsel %vm360_vm0, %v363_v41, %v366_v14  ;;  %v1327_v36 = vpack.c.bf16 %v642_v35, %v638_v34  ;;  %v637_v37 = vld [vmem:[#allocation2 + $0x180] sm:$0xff]  ;;  %v646_v39 = vld [vmem:[#allocation2 + $0x1c8] sm:$0xff]  ;;  %v608_v34 = vld [vmem:[#allocation2 + $0x98] sm:$0xff]  ;;  %v1409_v26 = vpack.c.bf16 %v675_v23, %v671_v22 }
 0x139   :  { %v256_v44 = vsel %vm245_vm1, nan, %v255_v42  ;;  %v368_v45 = vsel %vm245_vm1, nan, %v367_v43  ;;  %v641_v14 = vld [vmem:[#allocation2 + $0x1a0] sm:$0xff]  ;;  %v612_v35 = vld [vmem:[#allocation2 + $0xb8] sm:$0xff]  ;;  %v904_v22 = vld [vmem:[%s2058_s12 + $0x98] sm:$0xff] }
 0x13a   :  { %v264_v48 = vmul.f32 %v1110_v40, %v256_v44  ;;  %v376_v50 = vmul.f32 %v1115_v46, %v368_v45  ;;  %v1329_v38 = vpack.c.bf16 %v641_v14, %v637_v37  ;;  %v650_v40 = vld [vmem:[#allocation2 + $0x1e8] sm:$0xff]  ;;  %v645_v42 = vld [vmem:[#allocation2 + $0x1c0] sm:$0xff]  ;;  %v1375_v37 = vpack.c.bf16 %v612_v35, %v608_v34  ;;  %v607_v14 = vld [vmem:[#allocation2 + $0x90] sm:$0xff] }
 0x13b   :  { %v1331_v41 = vpack.c.bf16 %v650_v40, %v646_v39  ;;  %v649_v43 = vld [vmem:[#allocation2 + $0x1e0] sm:$0xff]  ;;  %v654_v45 = vld [vmem:[#allocation2 + $0x208] sm:$0xff]  ;;  %v616_v39 = vld [vmem:[#allocation2 + $0xd8] sm:$0xff] }
 0x13c   :  { %v265_v49 = vadd.f32 %v264_v48, %v152_v47  ;;  %v1333_v44 = vpack.c.bf16 %v649_v43, %v645_v42  ;;  %v658_v46 = vld [vmem:[#allocation2 + $0x228] sm:$0xff]  ;;  %v653_v48 = vld [vmem:[#allocation2 + $0x200] sm:$0xff]  ;;  %v620_v40 = vld [vmem:[#allocation2 + $0xf8] sm:$0xff] }
 0x13d   :  { %v1335_v47 = vpack.c.bf16 %v658_v46, %v654_v45  ;;  %v1379_v42 = vpack.c.bf16 %v620_v40, %v616_v39  ;;  %v615_v43 = vld [vmem:[#allocation2 + $0xd0] sm:$0xff]  ;;  %v624_v45 = vld [vmem:[#allocation2 + $0x118] sm:$0xff]  ;;  %v935_v23 = vld [vmem:[%s2058_s12 + $0x190] sm:$0xff] }
 0x13e   :  { %v377_v51 = vadd.f32 %v376_v50, %v265_v49  ;;  %v657_v49 = vld [vmem:[#allocation2 + $0x220] sm:$0xff]  ;;  %v628_v46 = vld [vmem:[#allocation2 + $0x138] sm:$0xff]  ;;  %v687_v34 = vld [vmem:[#allocation2 + $0x310] sm:$0xff] }
 0x13f   :  { %v1337_v50 = vpack.c.bf16 %v657_v49, %v653_v48  ;;  %v1383_v48 = vpack.c.bf16 %v628_v46, %v624_v45  ;;  %v623_v49 = vld [vmem:[#allocation2 + $0x110] sm:$0xff]  ;;  %v701_v45 = vld [vmem:[#allocation2 + $0x380] sm:$0xff] }
 0x140   :  { %1245 = vmatmul.mubr.f32.vlgmr.msra.gmra.mrb[0].mxu1 %v377_v51  ;;  %v662_v51 = vld [vmem:[#allocation2 + $0x248] sm:$0xff]  ;;  %v691_v35 = vld [vmem:[#allocation2 + $0x330] sm:$0xff]  ;;  %v705_v46 = vld [vmem:[#allocation2 + $0x3a0] sm:$0xff] }
 0x141   :  { %1306 = vmatpush1.bf16.msra.mxu1 %v1305_v0  ;;  %v1339_v8 = vpack.c.bf16 %v666_v52, %v662_v51  ;;  %v677_v0 = vld [vmem:[#allocation2 + $0x2c0] sm:$0xff]  ;;  %v632_v51 = vld [vmem:[#allocation2 + $0x158] sm:$0xff]  ;;  %v695_v39 = vld [vmem:[#allocation2 + $0x350] sm:$0xff] }
 0x142   :  { %1308 = vmatprep.subr.bf16.mxu1 %v1307_v3  ;;  %v1349_v2 = vpack.c.bf16 %v681_v1, %v677_v0  ;;  %v686_v3 = vld [vmem:[#allocation2 + $0x308] sm:$0xff]  ;;  %v636_v52 = vld [vmem:[#allocation2 + $0x178] sm:$0xff]  ;;  %v1395_v0 = vpack.c.bf16 %v652_v62, %v648_v61  ;;  %v647_v1 = vld [vmem:[#allocation2 + $0x1d0] sm:$0xff] }
 0x143   :  { %v1351_v5 = vpack.c.bf16 %v690_v4, %v686_v3  ;;  %v1387_v53 = vpack.c.bf16 %v636_v52, %v632_v51  ;;  %v656_v3 = vld [vmem:[#allocation2 + $0x218] sm:$0xff]  ;;  %v699_v40 = vld [vmem:[#allocation2 + $0x370] sm:$0xff]  ;;  %v710_v51 = vld [vmem:[#allocation2 + $0x3c8] sm:$0xff] }
 0x144   :  { %v660_v4 = vld [vmem:[#allocation2 + $0x238] sm:$0xff]  ;;  %v714_v52 = vld [vmem:[#allocation2 + $0x3e8] sm:$0xff]  ;;  %v902_v62 = vld [vmem:[%s2058_s12 + $0x88] sm:$0xff] }
 0x145   :  { %1310 = vmatpush1.bf16.msra.mxu1 %v1309_v6  ;;  %v685_v6 = vld [vmem:[#allocation2 + $0x300] sm:$0xff]  ;;  %v901_v61 = vld [vmem:[%s2058_s12 + $0x80] sm:$0xff] }
 0x146   :  { %1312 = vmatprep.subr.bf16.mxu1 %v1311_v11  ;;  %v1353_v10 = vpack.c.bf16 %v689_v9, %v685_v6  ;;  %v694_v11 = vld [vmem:[#allocation2 + $0x348] sm:$0xff]  ;;  %v1399_v6 = vpack.c.bf16 %v660_v4, %v656_v3  ;;  %v655_v9 = vld [vmem:[#allocation2 + $0x210] sm:$0xff]  ;;  %v506_v3 = vlaneseq }
 0x147   :  { %v1355_v13 = vpack.c.bf16 %v698_v12, %v694_v11  ;;  %v664_v11 = vld [vmem:[#allocation2 + $0x258] sm:$0xff] }
 0x148   :  { %v668_v12 = vld [vmem:[#allocation2 + $0x278] sm:$0xff]  ;;  %v1840_v4 = vshrl.u32 %v506_v3, 7  ;;  %v926_v3 = vld [vmem:[%s2058_s12 + $0x148] sm:$0xff] }
 0x149   :  { %1314 = vmatpush1.bf16.msra.mxu1 %v1313_v15  ;;  %v693_v15 = vld [vmem:[#allocation2 + $0x340] sm:$0xff] }
 0x14a   :  { %1316 = vmatprep.subr.bf16.mxu1 %v1315_v18  ;;  %v1357_v17 = vpack.c.bf16 %v697_v16, %v693_v15  ;;  %v702_v18 = vld [vmem:[#allocation2 + $0x388] sm:$0xff]  ;;  %v1403_v15 = vpack.c.bf16 %v668_v12, %v664_v11  ;;  %v663_v16 = vld [vmem:[#allocation2 + $0x250] sm:$0xff] }
 0x14b   :  { %v1359_v20 = vpack.c.bf16 %v706_v19, %v702_v18  ;;  %v672_v18 = vld [vmem:[#allocation2 + $0x298] sm:$0xff] }
 0x14c   :  { %v676_v19 = vld [vmem:[#allocation2 + $0x2b8] sm:$0xff] }
 0x14d   :  { %1318 = vmatpush1.bf16.msra.mxu1 %v1317_v21  ;;  %v1116_v21 = vld [vmem:[%s2053_s7] ss:$0 sm:$0xff] }
 0x14e   :  { %1320 = vmatprep.subr.bf16.mxu1 %v1319_v24 }
 0x151   :  { %1322 = vmatpush1.bf16.msra.mxu1 %v1321_v27 }
 0x152   :  { %1324 = vmatprep.subr.bf16.mxu1 %v1323_v30 }
 0x155   :  { %1326 = vmatpush1.bf16.msra.mxu1 %v1325_v33  ;;  %v603_v33 = vld [vmem:[#allocation2 + $0x70] sm:$0xff] }
 0x156   :  { %1328 = vmatprep.subr.bf16.mxu1 %v1327_v36  ;;  %v1373_v36 = vpack.c.bf16 %v603_v33, %v599_v32 }
 0x159   :  { %1330 = vmatpush1.bf16.msra.mxu1 %v1329_v38  ;;  %v611_v38 = vld [vmem:[#allocation2 + $0xb0] sm:$0xff] }
 0x15a   :  { %1332 = vmatprep.subr.bf16.mxu1 %v1331_v41  ;;  %v1377_v41 = vpack.c.bf16 %v611_v38, %v607_v14  ;;  %v1417_v14 = vpack.c.bf16 %v691_v35, %v687_v34  ;;  %v920_v34 = vld [vmem:[%s2058_s12 + $0x118] sm:$0xff]  ;;  %v905_v35 = vld [vmem:[%s2058_s12 + $0xa0] sm:$0xff] }
 0x15d   :  { %1334 = vmatpush1.bf16.msra.mxu1 %v1333_v44  ;;  %v619_v44 = vld [vmem:[#allocation2 + $0xf0] sm:$0xff] }
 0x15e   :  { %1336 = vmatprep.subr.bf16.mxu1 %v1335_v47  ;;  %v1381_v47 = vpack.c.bf16 %v619_v44, %v615_v43  ;;  %v1421_v43 = vpack.c.bf16 %v699_v40, %v695_v39  ;;  %v889_v40 = vld [vmem:[%s2058_s12 + $0x20] sm:$0xff] }
 0x161   :  { %1338 = vmatpush1.bf16.msra.mxu1 %v1337_v50  ;;  %v627_v50 = vld [vmem:[#allocation2 + $0x130] sm:$0xff] }
 0x162   :  { %1340 = vmatprep.subr.bf16.mxu1 %v1339_v8  ;;  %v1385_v8 = vpack.c.bf16 %v627_v50, %v623_v49  ;;  %v707_v49 = vld [vmem:[#allocation2 + $0x3b0] sm:$0xff] }
 0x165   :  { %1342 = vmatpush1.bf16.msra.mxu1 %v1341_v7  ;;  %v635_v7 = vld [vmem:[#allocation2 + $0x170] sm:$0xff] }
 0x166   :  { %1344 = vmatprep.subr.bf16.mxu1 %v1343_v57  ;;  %v1389_v57 = vpack.c.bf16 %v635_v7, %v631_v54  ;;  %v716_v54 = vld [vmem:[#allocation2 + $0x3f8] sm:$0xff]  ;;  %v709_v7 = vld [vmem:[#allocation2 + $0x3c0] sm:$0xff] }
 0x169   :  { %1346 = vmatpush1.bf16.msra.mxu1 %v1345_v60  ;;  %v643_v60 = vld [vmem:[#allocation2 + $0x1b0] sm:$0xff] }
 0x16a   :  { %1348 = vmatprep.subr.bf16.mxu1 %v1347_v63  ;;  %v1393_v63 = vpack.c.bf16 %v643_v60, %v639_v59  ;;  %v715_v59 = vld [vmem:[#allocation2 + $0x3f0] sm:$0xff] }
 0x16d   :  { %1350 = vmatpush1.bf16.msra.mxu1 %v1349_v2  ;;  %v651_v2 = vld [vmem:[#allocation2 + $0x1f0] sm:$0xff] }
 0x16e   :  { %1352 = vmatprep.subr.bf16.mxu1 %v1351_v5  ;;  %v1397_v5 = vpack.c.bf16 %v651_v2, %v647_v1  ;;  %v934_v1 = vld [vmem:[%s2058_s12 + $0x188] sm:$0xff] }
 0x171   :  { %1354 = vmatpush1.bf16.msra.mxu1 %v1353_v10  ;;  %v659_v10 = vld [vmem:[#allocation2 + $0x230] sm:$0xff] }
 0x172   :  { %1356 = vmatprep.subr.bf16.mxu1 %v1355_v13  ;;  %v1401_v13 = vpack.c.bf16 %v659_v10, %v655_v9  ;;  %v512_v9 = vsub.s32 1, %v1840_v4 }
 0x175   :  { %1358 = vmatpush1.bf16.msra.mxu1 %v1357_v17  ;;  %v667_v17 = vld [vmem:[#allocation2 + $0x270] sm:$0xff] }
 0x176   :  { %1360 = vmatprep.subr.bf16.mxu1 %v1359_v20  ;;  %v1405_v20 = vpack.c.bf16 %v667_v17, %v663_v16 }
 0x213   :  { %v467_v24 = vpop.f32.mrb[0].mxu1 }
 0x214   :  { %v468_v27 = vadd.f32 %v1116_v21, %v467_v24  ;;  %v1246_v28 = vpop.f32.mrb[1].mxu1  ;;  %v1407_v21 = vpack.c.bf16 %v676_v19, %v672_v18  ;;  %v680_v24 = vld [vmem:[#allocation2 + $0x2d8] sm:$0xff]  ;;  %v918_v19 = vld [vmem:[%s2058_s12 + $0x108] sm:$0xff] }
 0x215   :  { %v679_v28 = vld [vmem:[#allocation2 + $0x2d0] sm:$0xff]  ;;  %v917_v18 = vld [vmem:[%s2058_s12 + $0x100] sm:$0xff] }
 0x216   :  { %v471_v30 = vmax.f32 %v468_v27, 0.0  ;;  %v1411_v27 = vpack.c.bf16 %v684_v25, %v680_v24  ;;  %v936_v24 = vld [vmem:[%s2058_s12 + $0x198] sm:$0xff] }
 0x218   :  { %581 = vmatmul.mubr.f32.vlgmr.msra.gmra.mrb[2].mxu0 %v471_v30  ;;  %v688_v30 = vld [vmem:[#allocation2 + $0x318] sm:$0xff] }
 0x219   :  { %1370 = vmatpush1.bf16.msra.mxu0 %v1369_v29  ;;  %v683_v29 = vld [vmem:[#allocation2 + $0x2f0] sm:$0xff] }
 0x21a   :  { %1372 = vmatprep.subr.bf16.mxu0 %v1371_v31  ;;  %v692_v31 = vld [vmem:[#allocation2 + $0x338] sm:$0xff]  ;;  %v1413_v32 = vpack.c.bf16 %v683_v29, %v679_v28  ;;  %v887_v28 = vld [vmem:[%s2058_s12 + $0x10] sm:$0xff]  ;;  %v888_v29 = vld [vmem:[%s2058_s12 + $0x18] sm:$0xff] }
 0x21b   :  { %v1415_v33 = vpack.c.bf16 %v692_v31, %v688_v30 }
 0x21d   :  { %1374 = vmatpush1.bf16.msra.mxu0 %v1373_v36  ;;  %v696_v36 = vld [vmem:[#allocation2 + $0x358] sm:$0xff] }
 0x21e   :  { %1376 = vmatprep.subr.bf16.mxu0 %v1375_v37  ;;  %v700_v37 = vld [vmem:[#allocation2 + $0x378] sm:$0xff] }
 0x21f   :  { %v1419_v38 = vpack.c.bf16 %v700_v37, %v696_v36  ;;  %v906_v36 = vld [vmem:[%s2058_s12 + $0xa8] sm:$0xff]  ;;  %v937_v37 = vld [vmem:[%s2058_s12 + $0x1a0] sm:$0xff] }
 0x221   :  { %1378 = vmatpush1.bf16.msra.mxu0 %v1377_v41  ;;  %v704_v41 = vld [vmem:[#allocation2 + $0x398] sm:$0xff] }
 0x222   :  { %1380 = vmatprep.subr.bf16.mxu0 %v1379_v42  ;;  %v708_v42 = vld [vmem:[#allocation2 + $0x3b8] sm:$0xff] }
 0x223   :  { %v1423_v44 = vpack.c.bf16 %v708_v42, %v704_v41  ;;  %v890_v41 = vld [vmem:[%s2058_s12 + $0x28] sm:$0xff]  ;;  %v1439_v42 = vpack.c.bf16 %v906_v36, %v905_v35  ;;  %v915_v36 = vld [vmem:[%s2058_s12 + $0xf0] sm:$0xff] }
 0x225   :  { %1382 = vmatpush1.bf16.msra.mxu0 %v1381_v47  ;;  %v703_v47 = vld [vmem:[#allocation2 + $0x390] sm:$0xff] }
 0x226   :  { %1384 = vmatprep.subr.bf16.mxu0 %v1383_v48  ;;  %v1361_v48 = vpack.c.bf16 %v705_v46, %v701_v45  ;;  %v1425_v50 = vpack.c.bf16 %v707_v49, %v703_v47  ;;  %v922_v45 = vld [vmem:[%s2058_s12 + $0x128] sm:$0xff]  ;;  %v907_v46 = vld [vmem:[%s2058_s12 + $0xb0] sm:$0xff]  ;;  %v908_v47 = vld [vmem:[%s2058_s12 + $0xb8] sm:$0xff] }
 0x227   :  { %v940_v49 = vld [vmem:[%s2058_s12 + $0x1b8] sm:$0xff] }
 0x228   :  { %1362 = vmatpush1.bf16.msra.mxu1 %v1361_v48  ;;  %v939_v48 = vld [vmem:[%s2058_s12 + $0x1b0] sm:$0xff] }
 0x229   :  { %1386 = vmatpush1.bf16.msra.mxu0 %v1385_v8  ;;  %v712_v8 = vld [vmem:[#allocation2 + $0x3d8] sm:$0xff] }
 0x22a   :  { %1388 = vmatprep.subr.bf16.mxu0 %v1387_v53  ;;  %v1363_v53 = vpack.c.bf16 %v714_v52, %v710_v51  ;;  %v1427_v56 = vpack.c.bf16 %v716_v54, %v712_v8  ;;  %v891_v52 = vld [vmem:[%s2058_s12 + $0x30] sm:$0xff]  ;;  %v892_v8 = vld [vmem:[%s2058_s12 + $0x38] sm:$0xff]  ;;  %v1475_v54 = vpack.c.bf16 %v940_v49, %v939_v48  ;;  %v717_v48 = vld [vmem:[%s2057_s11] sm:$0xf]  ;;  %v733_v49 = vsub.s32 3, %v1840_v4 }
 0x22c   :  { %1364 = vmatprep.subr.bf16.mxu1 %v1363_v53  ;;  %v1443_v53 = vpack.c.bf16 %v908_v47, %v907_v46  ;;  %v729_v47 = vsub.s32 2, %v1840_v4 }
 0x22d   :  { %1390 = vmatpush1.bf16.msra.mxu0 %v1389_v57  ;;  %v1365_v57 = vpack.c.bf16 %v713_v55, %v709_v7  ;;  %v923_v7 = vld [vmem:[%s2058_s12 + $0x130] sm:$0xff]  ;;  %v924_v55 = vld [vmem:[%s2058_s12 + $0x138] sm:$0xff] }
 0x22e   :  { %1392 = vmatprep.subr.bf16.mxu0 %v1391_v58  ;;  %v711_v58 = vld [vmem:[#allocation2 + $0x3d0] sm:$0xff] }
 0x22f   :  { %v1429_v60 = vpack.c.bf16 %v715_v59, %v711_v58  ;;  %1366 = vmatpush1.bf16.msra.mxu1 %v1365_v57  ;;  %v910_v57 = vld [vmem:[%s2058_s12 + $0xc8] sm:$0xff]  ;;  %v941_v58 = vld [vmem:[%s2058_s12 + $0x1c0] sm:$0xff] }
 0x230   :  { %v942_v59 = vld [vmem:[%s2058_s12 + $0x1c8] sm:$0xff] }
 0x231   :  { %1394 = vmatpush1.bf16.msra.mxu0 %v1393_v63  ;;  %v933_v63 = vld [vmem:[%s2058_s12 + $0x180] sm:$0xff] }
 0x232   :  { %1396 = vmatprep.subr.bf16.mxu0 %v1395_v0  ;;  %v1431_v0 = vpack.c.bf16 %v902_v62, %v901_v61  ;;  %v1463_v2 = vpack.c.bf16 %v934_v1, %v933_v63  ;;  %v1477_v61 = vpack.c.bf16 %v924_v55, %v923_v7  ;;  %v893_v62 = vld [vmem:[%s2058_s12 + $0x40] sm:$0xff]  ;;  %v894_v63 = vld [vmem:[%s2058_s12 + $0x48] sm:$0xff]  ;;  %v1479_v1 = vpack.c.bf16 %v942_v59, %v941_v58 }
 0x234   :  { %1432 = vmatprep.subr.bf16.mxu1 %v1431_v0 }
 0x235   :  { %1398 = vmatpush1.bf16.msra.mxu0 %v1397_v5  ;;  %v508_v5 = vsub.s32 0, %v1840_v4 }
 0x236   :  { %1400 = vmatprep.subr.bf16.mxu0 %v1399_v6  ;;  %v504_v6 = vld [vmem:[%s2055_s9] sm:$0x3] }
 0x237   :  { %v509_v10 = vrot.slane %v504_v6, %v508_v5  ;;  %v513_v11 = vrot.slane %v504_v6, %v512_v9  ;;  %v911_v6 = vld [vmem:[%s2058_s12 + $0xd0] sm:$0xff] }
 0x239   :  { %1402 = vmatpush1.bf16.msra.mxu0 %v1401_v13  ;;  %v885_v13 = vld [vmem:[%s2058_s12] sm:$0xff] }
 0x23a   :  { %1404 = vmatprep.subr.bf16.mxu0 %v1403_v15  ;;  %v886_v15 = vld [vmem:[%s2058_s12 + $0x8] sm:$0xff] }
 0x23d   :  { %1406 = vmatpush1.bf16.msra.mxu0 %v1405_v20  ;;  %v903_v20 = vld [vmem:[%s2058_s12 + $0x90] sm:$0xff] }
 0x23e   :  { %1408 = vmatprep.subr.bf16.mxu0 %v1407_v21  ;;  %v1435_v31 = vpack.c.bf16 %v904_v22, %v903_v20  ;;  %v927_v20 = vld [vmem:[%s2058_s12 + $0x150] sm:$0xff]  ;;  %v913_v22 = vld [vmem:[%s2058_s12 + $0xe0] sm:$0xff] }
 0x241   :  { %1410 = vmatpush1.bf16.msra.mxu0 %v1409_v26  ;;  %v1433_v26 = vpack.c.bf16 %v886_v15, %v885_v13  ;;  %v1449_v13 = vpack.c.bf16 %v894_v63, %v893_v62 }
 0x242   :  { %1412 = vmatprep.subr.bf16.mxu0 %v1411_v27  ;;  %v1465_v27 = vpack.c.bf16 %v918_v19, %v917_v18 }
 0x245   :  { %1414 = vmatpush1.bf16.msra.mxu0 %v1413_v32  ;;  %v1467_v32 = vpack.c.bf16 %v936_v24, %v935_v23  ;;  %v914_v23 = vld [vmem:[%s2058_s12 + $0xe8] sm:$0xff]  ;;  %v945_v24 = vld [vmem:[%s2058_s12 + $0x1e0] sm:$0xff] }
 0x246   :  { %1416 = vmatprep.subr.bf16.mxu0 %v1415_v33  ;;  %v919_v33 = vld [vmem:[%s2058_s12 + $0x110] sm:$0xff] }
 0x247   :  { %v1469_v39 = vpack.c.bf16 %v920_v34, %v919_v33  ;;  %v930_v34 = vld [vmem:[%s2058_s12 + $0x168] sm:$0xff] }
 0x249   :  { %1418 = vmatpush1.bf16.msra.mxu0 %v1417_v14  ;;  %v938_v14 = vld [vmem:[%s2058_s12 + $0x1a8] sm:$0xff] }
 0x24a   :  { %1420 = vmatprep.subr.bf16.mxu0 %v1419_v38  ;;  %v1437_v38 = vpack.c.bf16 %v888_v29, %v887_v28  ;;  %v1455_v28 = vpack.c.bf16 %v914_v23, %v913_v22 }
 0x24d   :  { %1422 = vmatpush1.bf16.msra.mxu0 %v1421_v43  ;;  %v1471_v43 = vpack.c.bf16 %v938_v14, %v937_v37  ;;  %v916_v37 = vld [vmem:[%s2058_s12 + $0xf8] sm:$0xff]  ;;  %v947_v14 = vld [vmem:[%s2058_s12 + $0x1f0] sm:$0xff] }
 0x24e   :  { %1424 = vmatprep.subr.bf16.mxu0 %v1423_v44  ;;  %v921_v44 = vld [vmem:[%s2058_s12 + $0x120] sm:$0xff] }
 0x24f   :  { %v1473_v51 = vpack.c.bf16 %v922_v45, %v921_v44  ;;  %v931_v44 = vld [vmem:[%s2058_s12 + $0x170] sm:$0xff]  ;;  %v932_v45 = vld [vmem:[%s2058_s12 + $0x178] sm:$0xff] }
 0x250   :  { %v1493_v46 = vpack.c.bf16 %v932_v45, %v931_v44 }
 0x251   :  { %1426 = vmatpush1.bf16.msra.mxu0 %v1425_v50  ;;  %v1441_v50 = vpack.c.bf16 %v890_v41, %v889_v40  ;;  %v899_v40 = vld [vmem:[%s2058_s12 + $0x70] sm:$0xff]  ;;  %v900_v41 = vld [vmem:[%s2058_s12 + $0x78] sm:$0xff] }
 0x252   :  { %1428 = vmatprep.subr.bf16.mxu0 %v1427_v56  ;;  %v909_v56 = vld [vmem:[%s2058_s12 + $0xc0] sm:$0xff] }
 0x253   :  { %v1447_v0 = vpack.c.bf16 %v910_v57, %v909_v56 }
 0x255   :  { %1430 = vmatpush1.bf16.msra.mxu0 %v1429_v60  ;;  %v1445_v60 = vpack.c.bf16 %v892_v8, %v891_v52  ;;  %v726_v52 = vrot.slane %v717_v48, %v512_v9  ;;  %v734_v8 = vrot.slane %v717_v48, %v733_v49  ;;  %v1117_v9 = vld [vmem:[%s2059_s13] ss:$0 sm:$0xff] }
 0x256   :  { %1464 = vmatprep.subr.bf16.mxu0 %v1463_v2  ;;  %v925_v2 = vld [vmem:[%s2058_s12 + $0x140] sm:$0xff] }
 0x257   :  { %v1481_v15 = vpack.c.bf16 %v926_v3, %v925_v2 }
 0x2eb   :  { %v582_v12 = vpop.f32.mrb[2].mxu0 }
 0x2ec   :  { %v583_v16 = vadd.f32 %v582_v12, %v509_v10  ;;  %v584_v17 = vpop.f32.mrb[3].mxu0  ;;  %v912_v10 = vld [vmem:[%s2058_s12 + $0xd8] sm:$0xff] }
 0x2ed   :  { %v585_v21 = vadd.f32 %v584_v17, %v513_v11  ;;  %v943_v11 = vld [vmem:[%s2058_s12 + $0x1d0] sm:$0xff]  ;;  %v944_v12 = vld [vmem:[%s2058_s12 + $0x1d8] sm:$0xff]  ;;  %v1451_v18 = vpack.c.bf16 %v912_v10, %v911_v6 }
 0x2ee   :  { %v587_v30 = vmax.f32 %v583_v16, 0.0  ;;  %v895_v16 = vld [vmem:[%s2058_s12 + $0x50] sm:$0xff]  ;;  %v896_v17 = vld [vmem:[%s2058_s12 + $0x58] sm:$0xff]  ;;  %v1483_v19 = vpack.c.bf16 %v944_v12, %v943_v11 }
 0x2ef   :  { %v588_v25 = vmax.f32 %v585_v21, 0.0  ;;  %v928_v21 = vld [vmem:[%s2058_s12 + $0x158] sm:$0xff] }
 0x2f1   :  { %803 = vmatprep.mubr.f32.mxu1 %v588_v25  ;;  %874 = vmatprep.mubr.f32.mxu0 %v588_v25  ;;  %v946_v25 = vld [vmem:[%s2058_s12 + $0x1e8] sm:$0xff] }
 0x2f2   :  { %804 = vmatmul.mubr.f32.vlgmr.msra.gmra.mrb[2].mxu1 %v587_v30  ;;  %875 = vmatmul.mubr.f32.vlgmr.msra.gmra.mrb[4].mxu0 %v587_v30  ;;  %v1487_v29 = vpack.c.bf16 %v946_v25, %v945_v24  ;;  %v897_v30 = vld [vmem:[%s2058_s12 + $0x60] sm:$0xff] }
 0x2f3   :  { %1434 = vmatpush3.bf16.msra.mxu1 %v1433_v26  ;;  %1466 = vmatpush3.bf16.msra.mxu0 %v1465_v27  ;;  %v1453_v26 = vpack.c.bf16 %v896_v17, %v895_v16  ;;  %v1485_v27 = vpack.c.bf16 %v928_v21, %v927_v20 }
 0x2f4   :  { %1436 = vmatprep.subr.bf16.mxu1 %v1435_v31  ;;  %1468 = vmatprep.subr.bf16.mxu0 %v1467_v32  ;;  %v898_v31 = vld [vmem:[%s2058_s12 + $0x68] sm:$0xff]  ;;  %v929_v32 = vld [vmem:[%s2058_s12 + $0x160] sm:$0xff] }
 0x2f5   :  { %v1457_v33 = vpack.c.bf16 %v898_v31, %v897_v30  ;;  %v1489_v35 = vpack.c.bf16 %v930_v34, %v929_v32 }
 0x2f7   :  { %1438 = vmatpush3.bf16.msra.mxu1 %v1437_v38  ;;  %1470 = vmatpush3.bf16.msra.mxu0 %v1469_v39  ;;  %v1459_v38 = vpack.c.bf16 %v916_v37, %v915_v36  ;;  %v948_v39 = vld [vmem:[%s2058_s12 + $0x1f8] sm:$0xff] }
 0x2f8   :  { %1440 = vmatprep.subr.bf16.mxu1 %v1439_v42  ;;  %1472 = vmatprep.subr.bf16.mxu0 %v1471_v43  ;;  %v1491_v42 = vpack.c.bf16 %v948_v39, %v947_v14  ;;  %v1461_v43 = vpack.c.bf16 %v900_v41, %v899_v40 }
 0x2fb   :  { %1442 = vmatpush3.bf16.msra.mxu1 %v1441_v50  ;;  %1474 = vmatpush3.bf16.msra.mxu0 %v1473_v51  ;;  %v722_v50 = vrot.slane %v717_v48, %v508_v5  ;;  %v730_v51 = vrot.slane %v717_v48, %v729_v47 }
 0x2fc   :  { %1444 = vmatprep.subr.bf16.mxu1 %v1443_v53  ;;  %1476 = vmatprep.subr.bf16.mxu0 %v1475_v54 }
 0x2ff   :  { %1446 = vmatpush3.bf16.msra.mxu1 %v1445_v60  ;;  %1478 = vmatpush3.bf16.msra.mxu0 %v1477_v61 }
 0x300   :  { %1448 = vmatprep.subr.bf16.mxu1 %v1447_v0  ;;  %1480 = vmatprep.subr.bf16.mxu0 %v1479_v1 }
 0x303   :  { %1450 = vmatpush3.bf16.msra.mxu1 %v1449_v13  ;;  %1482 = vmatpush3.bf16.msra.mxu0 %v1481_v15 }
 0x304   :  { %1452 = vmatprep.subr.bf16.mxu1 %v1451_v18  ;;  %1484 = vmatprep.subr.bf16.mxu0 %v1483_v19 }
 0x307   :  { %1454 = vmatpush3.bf16.msra.mxu1 %v1453_v26  ;;  %1486 = vmatpush3.bf16.msra.mxu0 %v1485_v27 }
 0x308   :  { %1456 = vmatprep.subr.bf16.mxu1 %v1455_v28  ;;  %1488 = vmatprep.subr.bf16.mxu0 %v1487_v29 }
 0x30b   :  { %1458 = vmatpush3.bf16.msra.mxu1 %v1457_v33  ;;  %1490 = vmatpush3.bf16.msra.mxu0 %v1489_v35 }
 0x30c   :  { %1460 = vmatprep.subr.bf16.mxu1 %v1459_v38  ;;  %1492 = vmatprep.subr.bf16.mxu0 %v1491_v42 }
 0x30f   :  { %1462 = vmatpush3.bf16.msra.mxu1 %v1461_v43  ;;  %1494 = vmatpush3.bf16.msra.mxu0 %v1493_v46 }
 0x3c5   :  { %v805_v53 = vpop.f32.mrb[2].mxu1  ;;  %v876_v54 = vpop.f32.mrb[4].mxu0 }
 0x3c6   :  { %v806_v7 = vadd.f32 %v805_v53, %v722_v50  ;;  %v877_v55 = vadd.f32 %v876_v54, %v730_v51  ;;  %v807_v56 = vpop.f32.mrb[3].mxu1  ;;  %v878_v57 = vpop.f32.mrb[5].mxu0 }
 0x3c7   :  { %v808_v58 = vadd.f32 %v807_v56, %v726_v52  ;;  %v879_v59 = vadd.f32 %v878_v57, %v734_v8 }
 0x3c8   :  { %v881_v62 = vmax.f32 %v806_v7, 0.0  ;;  %v883_v63 = vmax.f32 %v877_v55, 0.0 }
 0x3c9   :  { %v882_v60 = vmax.f32 %v808_v58, 0.0  ;;  %v884_v61 = vmax.f32 %v879_v59, 0.0 }
 0x3cb   :  { %1020 = vmatprep.mubr.f32.mxu1 %v882_v60  ;;  %1090 = vmatprep.mubr.f32.mxu0 %v884_v61 }
 0x3cc   :  { %1021 = vmatmul.mubr.f32.vlgmr.msra.gmra.mrb[4].mxu1 %v881_v62  ;;  %1091 = vmatmul.mubr.f32.vlgmr.msra.gmra.mrb[6].mxu0 %v883_v63 }
 0x49f   :  { %v1169_v5 = vpop.f32.mrb[4].mxu1  ;;  %v1204_v4 = vpop.f32.mrb[6].mxu0 }
 0x4a0   :  { %v1170_v0 = vpop.f32.mrb[5].mxu1  ;;  %v1205_v1 = vpop.f32.mrb[7].mxu0 }
 0x4a1   :  { %v1171_v2 = vadd.f32 %v1170_v0, %v1169_v5  ;;  %v1206_v3 = vadd.f32 %v1205_v1, %v1204_v4 }
 0x4a3   :  { %v1023_v6 = vadd.f32 %v1171_v2, %v1117_v9 }
 0x4a5   :  { %v1093_v10 = vadd.f32 %v1206_v3, %v1023_v6 }
 0x4a7   :  { %1097 = vst.msk [vmem:[%s2060_s14] sm:$0xff] %vm1096_vm2, %v1093_v10 }
 0x4a8   :  { %1102 = vsyncpa [#allocation3], 1 }

</bundles_post_ra>
